<compile_context>
chip_gen: v6e
topology: v6e:2x2x1
jax: 0.10.0
libtpu: 0.0.40
codegen_flags: <defaults>
</compile_context>

<pallas_src>
import functools

import jax
import jax.numpy as jnp
from jax import lax
from jax.experimental import pallas as pl
from jax.experimental.pallas import tpu as pltpu

BN_EPS = 1e-5
LANE = 128
VMEM_LIMIT = 32 * 1024 * 1024  # explicit scoped-VMEM cap; plenty of headroom


def _round_up(x, m):
    return (x + m - 1) // m * m


def _conv_stats_kernel(patches_ref, w_ref, y_ref, stats_ref):
    """Pass 1: per-tile conv matmul; accumulate per-channel sum / sum-of-squares."""
    i = pl.program_id(0)

    @pl.when(i == 0)
    def _():
        stats_ref[...] = jnp.zeros_like(stats_ref)

    # Conv1d as matmul on the MXU, f32 accumulation.  No bias (cancels in BN).
    y = jnp.dot(patches_ref[...], w_ref[...], preferred_element_type=jnp.float32)
    y_ref[...] = y
    s = jnp.sum(y, axis=0, keepdims=True)       # (1, C_out_pad)
    ss = jnp.sum(y * y, axis=0, keepdims=True)  # (1, C_out_pad)
    stats_ref[...] += jnp.concatenate([s, ss], axis=0)


def _bn_relu_kernel(y_ref, scale_ref, shift_ref, o_ref):
    """Pass 2: folded BN affine + ReLU, lane-dense stores."""
    o_ref[...] = jnp.maximum(y_ref[...] * scale_ref[...] + shift_ref[...], 0.0)


def _im2col_1d(x, kernel, stride, dilation, pad):
    """x: (N, C, L) -> patches (N*L_out, C*K), rows match Conv1d weight layout."""
    n, c, l = x.shape
    l_out = (l + 2 * pad - dilation * (kernel - 1) - 1) // stride + 1
    xp = jnp.pad(x, ((0, 0), (0, 0), (pad, pad)))
    starts = jnp.arange(l_out) * stride
    cols = [xp[:, :, starts + k * dilation] for k in range(kernel)]  # each (N, C, L_out)
    patches = jnp.stack(cols, axis=2)            # (N, C, K, L_out)
    patches = patches.transpose(0, 3, 1, 2)      # (N, L_out, C, K)
    return patches.reshape(n * l_out, c * kernel), l_out


@functools.partial(
    jax.jit, static_argnames=("kernel", "stride", "dilation", "block_m")
)
def cbr_forward(x, conv_b, conv_w, bn_gamma, bn_beta, *,
                kernel, stride, dilation, block_m=512):
    """x: (N, C_in, L) f32 -> (N, C_out, L_out) f32 (Conv1d + BN(train) + ReLU)."""
    del conv_b  # training-mode BN subtracts the batch mean -> conv bias cancels exactly
    n, c_in, l = x.shape
    c_out = conv_w.shape[0]
    pad = (kernel - 1) // 2
    ck = c_in * kernel

    # TODO(synk): for stride==1 the patch tile could be built in-kernel from an
    # (tile+K-1)-row slab of x to avoid materializing the Kx im2col matrix in HBM.
    patches, l_out = _im2col_1d(x, kernel, stride, dilation, pad)  # (M, C_in*K)
    m = n * l_out

    # Pad lane dim (C_out) to a multiple of 128 and the M axis to the row tile.
    c_out_p = _round_up(c_out, LANE)
    tm = min(block_m, _round_up(m, 8))
    m_p = _round_up(m, tm)
    num_tiles = m_p // tm

    patches_p = jnp.pad(patches, ((0, m_p - m), (0, 0)))           # zero rows -> y rows = 0
    w_mat = jnp.pad(conv_w.reshape(c_out, ck).T,
                    ((0, 0), (0, c_out_p - c_out)))                # (CK, C_out_pad)

    params_seq = pltpu.CompilerParams(
        dimension_semantics=("arbitrary",), vmem_limit_bytes=VMEM_LIMIT)
    params_par = pltpu.CompilerParams(
        dimension_semantics=("parallel",), vmem_limit_bytes=VMEM_LIMIT)

    # ---- Pass 1: tiled conv matmul + per-channel sum / sum-of-squares. ----
    y2d, stats = pl.pallas_call(
        _conv_stats_kernel,
        out_shape=(
            jax.ShapeDtypeStruct((m_p, c_out_p), jnp.float32),
            jax.ShapeDtypeStruct((2, c_out_p), jnp.float32),
        ),
        grid=(num_tiles,),
        in_specs=[
            pl.BlockSpec((tm, ck), lambda i: (i, 0)),
            pl.BlockSpec((ck, c_out_p), lambda i: (0, 0)),
        ],
        out_specs=(
            pl.BlockSpec((tm, c_out_p), lambda i: (i, 0)),
            pl.BlockSpec((2, c_out_p), lambda i: (0, 0)),  # VMEM-resident accumulator
        ),
        compiler_params=params_seq,
    )(patches_p, w_mat)

    # ---- Fold BN into one per-channel scale/shift (tiny XLA op). ----
    inv_m = 1.0 / m  # divide by the *true* row count; padded rows contribute 0
    mean = stats[0] * inv_m
    var = jnp.maximum(stats[1] * inv_m - mean * mean, 0.0)
    gamma_p = jnp.pad(bn_gamma, (0, c_out_p - c_out))
    beta_p = jnp.pad(bn_beta, (0, c_out_p - c_out))
    scale = (gamma_p * lax.rsqrt(var + BN_EPS)).reshape(1, c_out_p)
    shift = (beta_p - mean * scale[0]).reshape(1, c_out_p)

    # ---- Pass 2: normalize + ReLU, parallel over row tiles. ----
    out2d = pl.pallas_call(
        _bn_relu_kernel,
        out_shape=jax.ShapeDtypeStruct((m_p, c_out_p), jnp.float32),
        grid=(num_tiles,),
        in_specs=[
            pl.BlockSpec((tm, c_out_p), lambda i: (i, 0)),
            pl.BlockSpec((1, c_out_p), lambda i: (0, 0)),
            pl.BlockSpec((1, c_out_p), lambda i: (0, 0)),
        ],
        out_specs=pl.BlockSpec((tm, c_out_p), lambda i: (i, 0)),
        compiler_params=params_par,
    )(y2d, scale, shift)

    # (M_pad, C_out_pad) -> (N, L_out, C_out) -> (N, C_out, L_out)
    return out2d[:m, :c_out].reshape(n, l_out, c_out).transpose(0, 2, 1)


def init_params(key, in_channels, out_channels, kernel):
    """Deterministic init mirroring PyTorch defaults (uniform +/- 1/sqrt(fan_in))."""
    k_w, k_b = jax.random.split(key)
    fan_in = in_channels * kernel
    bound = 1.0 / (fan_in ** 0.5)
    conv_w = jax.random.uniform(
        k_w, (out_channels, in_channels, kernel), jnp.float32, -bound, bound)
    conv_b = jax.random.uniform(k_b, (out_channels,), jnp.float32, -bound, bound)
    bn_gamma = jnp.ones((out_channels,), jnp.float32)
    bn_beta = jnp.zeros((out_channels,), jnp.float32)
    return conv_w, conv_b, bn_gamma, bn_beta


if __name__ == "__main__":
    # Small shapes consistent with the module's forward.
    N, C_IN, C_OUT, L = 2, 4, 8, 16
    KERNEL, STRIDE, DILATION = 3, 1, 1

    key = jax.random.PRNGKey(0)
    k_x, k_p = jax.random.split(key)
    x = jax.random.normal(k_x, (N, C_IN, L), jnp.float32)
    conv_w, conv_b, bn_gamma, bn_beta = init_params(k_p, C_IN, C_OUT, KERNEL)

    out = cbr_forward(
        x, conv_b, conv_w, bn_gamma, bn_beta,
        kernel=KERNEL, stride=STRIDE, dilation=DILATION,
    )
    jax.block_until_ready(out)

    # Sanity check against plain-JAX Conv1d (with bias) + BN(train) + ReLU.
    pad = (KERNEL - 1) // 2
    ref = lax.conv_general_dilated(
        x, conv_w, window_strides=(STRIDE,), padding=[(pad, pad)],
        rhs_dilation=(DILATION,), dimension_numbers=("NCH", "OIH", "NCH"),
    ) + conv_b[None, :, None]
    mu = ref.mean(axis=(0, 2), keepdims=True)
    var = ((ref - mu) ** 2).mean(axis=(0, 2), keepdims=True)
    ref = (ref - mu) * lax.rsqrt(var + BN_EPS)
    ref = ref * bn_gamma[None, :, None] + bn_beta[None, :, None]
    ref = jnp.maximum(ref, 0.0)

    assert out.shape == ref.shape, (out.shape, ref.shape)
    err = float(jnp.abs(out - ref).max())
    assert jnp.allclose(out, ref, atol=1e-4, rtol=1e-4), err

    print("KERNEL_OK")
</pallas_src>

<mosaic_0001>
module attributes {stable_mosaic.version = 11 : i64} {
  func.func @_conv_stats_kernel(%arg0: i32, %arg1: memref<32x12xf32, #tpu.memory_space<vmem>>, %arg2: memref<12x128xf32, #tpu.memory_space<vmem>>, %arg3: memref<32x128xf32, #tpu.memory_space<vmem>>, %arg4: memref<2x128xf32, #tpu.memory_space<vmem>>) attributes {dimension_semantics = [#tpu.dimension_semantics<arbitrary>], iteration_bounds = array<i64: 1>, scalar_prefetch = 0 : i64, scratch_operands = 0 : i64, tpu.core_type = #tpu.core_type<tc>, window_params = [{transform_indices = @transform_0, window_bounds = array<i64: 32, 12>}, {pipeline_mode = #tpu.pipeline_mode<synchronous>, transform_indices = @transform_1, window_bounds = array<i64: 12, 128>}, {transform_indices = @transform_2, window_bounds = array<i64: 32, 128>}, {pipeline_mode = #tpu.pipeline_mode<synchronous>, transform_indices = @transform_3, window_bounds = array<i64: 2, 128>}]} {
    %c0_i32 = arith.constant 0 : i32
    %0 = arith.cmpi eq, %arg0, %c0_i32 : i32
    %1 = arith.extui %0 : i1 to i32
    %c0_i32_0 = arith.constant 0 : i32
    %2 = arith.cmpi ne, %1, %c0_i32_0 : i32
    scf.if %2 {
      %cst_12 = arith.constant 0.000000e+00 : f32
      %16 = vector.broadcast %cst_12 : f32 to vector<2x128xf32>
      %c0_13 = arith.constant 0 : index
      %c0_14 = arith.constant 0 : index
      %17 = vector.load %arg4[%c0_13, %c0_14] : memref<2x128xf32, #tpu.memory_space<vmem>>, vector<2x128xf32>
      tpu.vector_store %arg4[%c0_13, %c0_14], %16 {strides = array<i32>} : memref<2x128xf32, #tpu.memory_space<vmem>>, vector<2x128xf32>,
    } else {
    }
    %c0 = arith.constant 0 : index
    %c0_1 = arith.constant 0 : index
    %3 = vector.load %arg1[%c0, %c0_1] : memref<32x12xf32, #tpu.memory_space<vmem>>, vector<32x12xf32>
    %c0_2 = arith.constant 0 : index
    %c0_3 = arith.constant 0 : index
    %4 = vector.load %arg2[%c0_2, %c0_3] : memref<12x128xf32, #tpu.memory_space<vmem>>, vector<12x128xf32>
    %cst = arith.constant dense<0.000000e+00> : vector<32x128xf32>
    %5 = tpu.matmul %3, %4, %cst {dimension_numbers = #tpu.dot_dimension_numbers<[1], [0], [0], [1], [0, 0, 1, 1], [], []>} : vector<32x12xf32>, vector<12x128xf32>, vector<32x128xf32> -> vector<32x128xf32>
    %c0_4 = arith.constant 0 : index
    %c0_5 = arith.constant 0 : index
    %6 = vector.load %arg3[%c0_4, %c0_5] : memref<32x128xf32, #tpu.memory_space<vmem>>, vector<32x128xf32>
    tpu.vector_store %arg3[%c0_4, %c0_5], %5 {strides = array<i32>} : memref<32x128xf32, #tpu.memory_space<vmem>>, vector<32x128xf32>,
    %cst_6 = arith.constant dense<0.000000e+00> : vector<128xf32>
    %7 = vector.multi_reduction <add>, %5, %cst_6 [0] : vector<32x128xf32> to vector<128xf32>
    %8 = vector.shape_cast %7 : vector<128xf32> to vector<1x128xf32>
    %9 = arith.mulf %5, %5 : vector<32x128xf32>
    %cst_7 = arith.constant dense<0.000000e+00> : vector<128xf32>
    %10 = vector.multi_reduction <add>, %9, %cst_7 [0] : vector<32x128xf32> to vector<128xf32>
    %11 = vector.shape_cast %10 : vector<128xf32> to vector<1x128xf32>
    %c0_8 = arith.constant 0 : index
    %c0_9 = arith.constant 0 : index
    %12 = vector.load %arg4[%c0_8, %c0_9] : memref<2x128xf32, #tpu.memory_space<vmem>>, vector<2x128xf32>
    %13 = tpu.concatenate %8, %11 in 0 : vector<1x128xf32>, vector<1x128xf32> -> vector<2x128xf32>
    %14 = arith.addf %12, %13 : vector<2x128xf32>
    %c0_10 = arith.constant 0 : index
    %c0_11 = arith.constant 0 : index
    %15 = vector.load %arg4[%c0_10, %c0_11] : memref<2x128xf32, #tpu.memory_space<vmem>>, vector<2x128xf32>
    tpu.vector_store %arg4[%c0_10, %c0_11], %14 {strides = array<i32>} : memref<2x128xf32, #tpu.memory_space<vmem>>, vector<2x128xf32>,
    return
  }
  func.func @transform_0(%arg0: i32) -> (i32, i32) {
    %c0_i32 = arith.constant 0 : i32
    %c0_i32_0 = arith.constant 0 : i32
    return %arg0, %c0_i32 : i32, i32
  }
  func.func @transform_1(%arg0: i32) -> (i32, i32) {
    %c0_i32 = arith.constant 0 : i32
    %c0_i32_0 = arith.constant 0 : i32
    %c0_i32_1 = arith.constant 0 : i32
    return %c0_i32, %c0_i32_0 : i32, i32
  }
  func.func @transform_2(%arg0: i32) -> (i32, i32) {
    %c0_i32 = arith.constant 0 : i32
    %c0_i32_0 = arith.constant 0 : i32
    return %arg0, %c0_i32 : i32, i32
  }
  func.func @transform_3(%arg0: i32) -> (i32, i32) {
    %c0_i32 = arith.constant 0 : i32
    %c0_i32_0 = arith.constant 0 : i32
    %c0_i32_1 = arith.constant 0 : i32
    return %c0_i32, %c0_i32_0 : i32, i32
  }
}

module attributes {stable_mosaic.version = 11 : i64} {
  func.func @_bn_relu_kernel(%arg0: i32, %arg1: memref<32x128xf32, #tpu.memory_space<vmem>>, %arg2: memref<1x128xf32, #tpu.memory_space<vmem>>, %arg3: memref<1x128xf32, #tpu.memory_space<vmem>>, %arg4: memref<32x128xf32, #tpu.memory_space<vmem>>) attributes {dimension_semantics = [#tpu.dimension_semantics<parallel>], iteration_bounds = array<i64: 1>, scalar_prefetch = 0 : i64, scratch_operands = 0 : i64, tpu.core_type = #tpu.core_type<tc>, window_params = [{transform_indices = @transform_0, window_bounds = array<i64: 32, 128>}, {pipeline_mode = #tpu.pipeline_mode<synchronous>, transform_indices = @transform_1, window_bounds = array<i64: 1, 128>}, {pipeline_mode = #tpu.pipeline_mode<synchronous>, transform_indices = @transform_2, window_bounds = array<i64: 1, 128>}, {transform_indices = @transform_3, window_bounds = array<i64: 32, 128>}]} {
    %c0 = arith.constant 0 : index
    %c0_0 = arith.constant 0 : index
    %0 = vector.load %arg1[%c0, %c0_0] : memref<32x128xf32, #tpu.memory_space<vmem>>, vector<32x128xf32>
    %c0_1 = arith.constant 0 : index
    %c0_2 = arith.constant 0 : index
    %1 = vector.load %arg2[%c0_1, %c0_2] : memref<1x128xf32, #tpu.memory_space<vmem>>, vector<1x128xf32>
    %2 = vector.broadcast %1 : vector<1x128xf32> to vector<32x128xf32>
    %3 = arith.mulf %0, %2 : vector<32x128xf32>
    %c0_3 = arith.constant 0 : index
    %c0_4 = arith.constant 0 : index
    %4 = vector.load %arg3[%c0_3, %c0_4] : memref<1x128xf32, #tpu.memory_space<vmem>>, vector<1x128xf32>
    %5 = vector.broadcast %4 : vector<1x128xf32> to vector<32x128xf32>
    %6 = arith.addf %3, %5 : vector<32x128xf32>
    %cst = arith.constant 0.000000e+00 : f32
    %7 = vector.broadcast %cst : f32 to vector<32x128xf32>
    %8 = arith.maximumf %6, %7 : vector<32x128xf32>
    %c0_5 = arith.constant 0 : index
    %c0_6 = arith.constant 0 : index
    %9 = vector.load %arg4[%c0_5, %c0_6] : memref<32x128xf32, #tpu.memory_space<vmem>>, vector<32x128xf32>
    tpu.vector_store %arg4[%c0_5, %c0_6], %8 {strides = array<i32>} : memref<32x128xf32, #tpu.memory_space<vmem>>, vector<32x128xf32>,
    return
  }
  func.func @transform_0(%arg0: i32) -> (i32, i32) {
    %c0_i32 = arith.constant 0 : i32
    %c0_i32_0 = arith.constant 0 : i32
    return %arg0, %c0_i32 : i32, i32
  }
  func.func @transform_1(%arg0: i32) -> (i32, i32) {
    %c0_i32 = arith.constant 0 : i32
    %c0_i32_0 = arith.constant 0 : i32
    %c0_i32_1 = arith.constant 0 : i32
    return %c0_i32, %c0_i32_0 : i32, i32
  }
  func.func @transform_2(%arg0: i32) -> (i32, i32) {
    %c0_i32 = arith.constant 0 : i32
    %c0_i32_0 = arith.constant 0 : i32
    %c0_i32_1 = arith.constant 0 : i32
    return %c0_i32, %c0_i32_0 : i32, i32
  }
  func.func @transform_3(%arg0: i32) -> (i32, i32) {
    %c0_i32 = arith.constant 0 : i32
    %c0_i32_0 = arith.constant 0 : i32
    return %arg0, %c0_i32 : i32, i32
  }
}

</mosaic_0001>

<bundles_post_ra>
// kernel: cbr_forward.2
= control target key start
LH: loop header
LB: loop body
LE: loop exit
PB: predicated region body
PF: predicated region fallthrough
CT: control target
= control target key end

     0   :  { %vm37_vm0 = vcmask 1043456   ;;  %vm24_vm1 = vcmask 97280   ;;  %v191_v6 = vmov 0.0   ;;  %vm153_vm2 = vcmask 1040384   ;;  %s251_s1 = inlined_call_operand.vmem [shape: f32[12,128], index: 1, kind: input, shape index: {}]   ;;  %s252_s0 = inlined_call_operand.vmem [shape: f32[32,12], index: 0, kind: input, shape index: {}]   ;;  %s253_s3 = inlined_call_operand.vmem [shape: f32[2,128], index: 3, kind: output, shape index: {1}]   ;;  %s254_s2 = inlined_call_operand.vmem [shape: f32[32,128], index: 2, kind: output, shape index: {0}]  }
   0x1   :  { %v23_v0 = vld [vmem:[%s251_s1 + $0x8] sm:$0xf]  ;;  %v22_v1 = vld [vmem:[%s251_s1] sm:$0xff]  ;;  %v20_v3 = vld [vmem:[%s252_s0 + $0x10] sm:$0xff]  ;;  %17 = vst [vmem:[%s253_s3] sm:$0x3] %v191_v6 }
   0x2   :  { %176 = vmatprep.subr.msk.mxu0 %vm37_vm0, %v23_v0  ;;  %186 = vmatprep.subr.msk.mxu1 %vm37_vm0, %v23_v0  ;;  %v18_v2 = vld [vmem:[%s252_s0] sm:$0xff]  ;;  %v19_v4 = vld [vmem:[%s252_s0 + $0x8] sm:$0xff]  ;;  %v21_v5 = vld [vmem:[%s252_s0 + $0x18] sm:$0xff] }
   0x3   :  { %177 = vmatpush3.msk.msra.mxu0 %vm37_vm0, %v23_v0  ;;  %188 = vmatpush3.msk.msra.mxu1 %vm37_vm0, %v23_v0 }
   0x4   :  { %178 = vmatprep.subr.mxu0 %v22_v1  ;;  %187 = vmatprep.subr.mxu1 %v22_v1 }
   0x5   :  { %179 = vmatpush3.msra.mxu0 %v22_v1  ;;  %189 = vmatpush3.msra.mxu1 %v22_v1 }
   0x6   :  { %180 = vmatprep.mubr.msk.f32.mxu0 %vm24_vm1, %v18_v2  ;;  %183 = vmatprep.mubr.msk.f32.mxu1 %vm24_vm1, %v20_v3 }
   0x7   :  { %181 = vmatmul.mubr.msk.f32.vlgmr.msra.gmra.mxu0 %vm24_vm1, %v19_v4  ;;  %184 = vmatmul.mubr.msk.f32.vlgmr.msra.gmra.mxu1 %vm24_vm1, %v21_v5 }
   0x8   :  { %v152_v33 = vld [vmem:[%s253_s3] sm:$0x3] }
  0xc7   :  { %v182_v7 = vpop.f32.mrf.mxu0  ;;  %v185_v8 = vpop.f32.mrf.mxu1 }
  0xc8   :  { %127 = vst [vmem:[%s254_s2 + $0x8] sm:$0xff] %v182_v7  ;;  %129 = vst [vmem:[%s254_s2 + $0x18] sm:$0xff] %v185_v8  ;;  %v140_v11 = vmul.f32 %v182_v7, %v182_v7  ;;  %v142_v17 = vmul.f32 %v185_v8, %v185_v8 }
  0xc9   :  { %v107_v9 = vpop.f32.mrf.mxu0  ;;  %v117_v10 = vpop.f32.mrf.mxu1 }
  0xca   :  { %126 = vst [vmem:[%s254_s2] sm:$0xff] %v107_v9  ;;  %v130_v12 = vadd.f32 %v182_v7, %v107_v9  ;;  %v139_v13 = vmul.f32 %v107_v9, %v107_v9  ;;  %128 = vst [vmem:[%s254_s2 + $0x10] sm:$0xff] %v117_v10  ;;  %v141_v16 = vmul.f32 %v117_v10, %v117_v10 }
  0xcc   :  { %v143_v14 = vadd.f32 %v140_v11, %v139_v13  ;;  %v131_v15 = vadd.f32 %v130_v12, %v117_v10 }
  0xce   :  { %v132_v18 = vadd.f32 %v185_v8, %v131_v15  ;;  %v144_v19 = vadd.f32 %v143_v14, %v141_v16 }
  0xd0   :  { %v133_v20 = vrot.slane %v132_v18, 4  ;;  %v145_v21 = vadd.f32 %v144_v19, %v142_v17 }
  0xd2   :  { %v134_v22 = vadd.f32 %v133_v20, %v132_v18  ;;  %v146_v23 = vrot.slane %v145_v21, 4 }
  0xd4   :  { %v135_v24 = vrot.slane %v134_v22, 2  ;;  %v147_v25 = vadd.f32 %v146_v23, %v145_v21 }
  0xd6   :  { %v136_v26 = vadd.f32 %v135_v24, %v134_v22  ;;  %v148_v27 = vrot.slane %v147_v25, 2 }
  0xd8   :  { %v137_v28 = vrot.slane %v136_v26, 1  ;;  %v149_v29 = vadd.f32 %v148_v27, %v147_v25 }
  0xda   :  { %v150_v30 = vrot.slane %v149_v29, 1  ;;  %v138_v31 = vadd.f32 %v137_v28, %v136_v26 }
  0xdc   :  { %v151_v32 = vadd.f32 %v150_v30, %v149_v29 }
  0xde   :  { %v154_v34 = vsel %vm153_vm2, %v138_v31, %v151_v32 }
  0xdf   :  { %v155_v35 = vadd.f32 %v154_v34, %v152_v33 }
  0xe1   :  { %156 = vst [vmem:[%s253_s3] sm:$0x3] %v155_v35 }

// kernel: cbr_forward.3
= control target key start
LH: loop header
LB: loop body
LE: loop exit
PB: predicated region body
PF: predicated region fallthrough
CT: control target
= control target key end

     0   :  { %s104_s0 = inlined_call_operand.vmem [shape: f32[32,128], index: 0, kind: input, shape index: {}]   ;;  %s105_s1 = inlined_call_operand.vmem [shape: f32[1,128], index: 1, kind: input, shape index: {}]   ;;  %s106_s2 = inlined_call_operand.vmem [shape: f32[1,128], index: 2, kind: input, shape index: {}]   ;;  %s107_s3 = inlined_call_operand.vmem [shape: f32[32,128], index: 3, kind: output, shape index: {}]  }
   0x1   :  { %v14_v0 = vld [vmem:[%s104_s0] sm:$0xff]  ;;  %v15_v4 = vld [vmem:[%s104_s0 + $0x8] sm:$0xff]  ;;  %v16_v5 = vld [vmem:[%s104_s0 + $0x10] sm:$0xff] }
   0x2   :  { %v52_v1 = vld [vmem:[%s105_s1] ss:$0 sm:$0xff]  ;;  %v17_v6 = vld [vmem:[%s104_s0 + $0x18] sm:$0xff] }
   0x3   :  { %v53_v2 = vld [vmem:[%s106_s2] ss:$0 sm:$0xff]  ;;  %v25_v3 = vmul.f32 %v52_v1, %v14_v0  ;;  %v26_v7 = vmul.f32 %v52_v1, %v15_v4  ;;  %v27_v8 = vmul.f32 %v52_v1, %v16_v5  ;;  %v28_v9 = vmul.f32 %v52_v1, %v17_v6 }
   0x5   :  { %v36_v10 = vadd.f32 %v53_v2, %v25_v3  ;;  %v37_v11 = vadd.f32 %v53_v2, %v26_v7  ;;  %v38_v12 = vadd.f32 %v53_v2, %v27_v8  ;;  %v39_v13 = vadd.f32 %v53_v2, %v28_v9 }
   0x7   :  { %v40_v14 = vmax.f32 %v36_v10, 0.0  ;;  %v41_v15 = vmax.f32 %v37_v11, 0.0  ;;  %v42_v16 = vmax.f32 %v38_v12, 0.0  ;;  %v43_v17 = vmax.f32 %v39_v13, 0.0 }
   0x9   :  { %44 = vst [vmem:[%s107_s3] sm:$0xff] %v40_v14  ;;  %45 = vst [vmem:[%s107_s3 + $0x8] sm:$0xff] %v41_v15 }
   0xa   :  { %46 = vst [vmem:[%s107_s3 + $0x10] sm:$0xff] %v42_v16  ;;  %47 = vst [vmem:[%s107_s3 + $0x18] sm:$0xff] %v43_v17 }

</bundles_post_ra>
